<compile_context>
chip_gen: v6e
topology: v6e:2x2x1
jax: 0.10.0
libtpu: 0.0.40
codegen_flags: <defaults>
</compile_context>

<pallas_src>
import functools
import numpy as np
import jax
import jax.numpy as jnp
from jax import lax
from jax.experimental import pallas as pl
from jax.experimental.pallas import tpu as pltpu


# contract the last dim of both operands: (M, K) x (N, K) -> (M, N)   (== x @ W.T)
_DN_LAST = (((1,), (1,)), ((), ()))

_VMEM_LIMIT = 64 * 1024 * 1024


def _round_up(x, m):
    return ((x + m - 1) // m) * m


def _const_spec(shape):
    """Grid-invariant 2-D block: constant index_map, single-buffered (saves VMEM)."""
    return pl.BlockSpec(shape, lambda i: (0, 0), pipeline_mode=pl.Buffered(1))


# --------------------------------------------------------------------------------------
# Kernel 1: K / V projections over the S source tokens (run once, tiled over S)
# --------------------------------------------------------------------------------------
def _kv_projection_kernel(src_ref, val_ref, kw_ref, kb_ref, vw_ref, vb_ref,
                          k_ref, v_ref):
    f32 = jnp.float32
    k = lax.dot_general(src_ref[...], kw_ref[...], _DN_LAST,
                        preferred_element_type=f32) + kb_ref[...]
    v = lax.dot_general(val_ref[...], vw_ref[...], _DN_LAST,
                        preferred_element_type=f32) + vb_ref[...]
    k_ref[...] = k.astype(k_ref.dtype)
    v_ref[...] = v.astype(v_ref.dtype)


# --------------------------------------------------------------------------------------
# Kernel 2: fused Q projection + per-head softmax attention + output projection
# --------------------------------------------------------------------------------------
def _attention_out_kernel(x_ref, k_ref, v_ref, qw_ref, qb_ref, ow_ref, ob_ref,
                          o_ref, attn_ref, *, n_heads, head_dim):
    f32, bf16 = jnp.float32, jnp.bfloat16
    x = x_ref[...]                                            # (tm, d_model) bf16

    for h in range(n_heads):                                  # static unroll, H is small
        sl = slice(h * head_dim, (h + 1) * head_dim)
        # Per-head query projection straight from a sublane slice of the weight ref
        # (1/sqrt(E) already folded into q_w / q_b in the wrapper).
        q_h = (lax.dot_general(x, qw_ref[sl, :], _DN_LAST,
                               preferred_element_type=f32)
               + qb_ref[:, sl]).astype(bf16)                  # (tm, E)
        s = lax.dot_general(q_h, k_ref[:, sl], _DN_LAST,
                            preferred_element_type=f32)       # (tm, S) f32
        m = jnp.max(s, axis=-1, keepdims=True)
        p = jnp.exp(s - m)                                    # (tm, S) f32
        inv = pl.reciprocal(jnp.sum(p, axis=-1, keepdims=True), approx=True)
        # Normalize AFTER the AV matmul: tm*E multiplies instead of tm*S.
        o_h = jnp.dot(p.astype(bf16), v_ref[:, sl],
                      preferred_element_type=f32) * inv       # (tm, E) f32
        attn_ref[:, sl] = o_h.astype(bf16)                    # head-concat via scratch store

    # Single lane-dense output projection with K = H*E contraction (good MXU fill).
    o_ref[...] = (lax.dot_general(attn_ref[...], ow_ref[...], _DN_LAST,
                                  preferred_element_type=f32)
                  + ob_ref[...]).astype(o_ref.dtype)


# --------------------------------------------------------------------------------------
# Wrapper
# --------------------------------------------------------------------------------------
def reprogramming_layer(params, target_embedding, source_embedding, value_embedding,
                        n_heads, *, block_m=512, block_s=256, out_dtype=jnp.bfloat16):
    """ReprogrammingLayer.forward.  target: (B, L, d_model), source/value: (S, d_llm)."""
    B, L, d_model = target_embedding.shape
    S, d_llm = source_embedding.shape
    HE = params['q_w'].shape[0]                               # d_keys * n_heads
    assert HE % n_heads == 0
    E = HE // n_heads
    bf16, f32 = jnp.bfloat16, jnp.float32

    # ---- 1) K / V projections: computed once over the S source tokens ---------------
    ts = min(block_s, _round_up(S, 16))
    S_pad = _round_up(S, ts)
    src = source_embedding.astype(bf16)
    val = value_embedding.astype(bf16)
    if S_pad != S:
        src = jnp.pad(src, ((0, S_pad - S), (0, 0)))
        val = jnp.pad(val, ((0, S_pad - S), (0, 0)))

    k, v = pl.pallas_call(
        _kv_projection_kernel,
        out_shape=(jax.ShapeDtypeStruct((S_pad, HE), bf16),
                   jax.ShapeDtypeStruct((S_pad, HE), bf16)),
        grid=(S_pad // ts,),
        in_specs=[
            pl.BlockSpec((ts, d_llm), lambda i: (i, 0)),      # source rows (tiled)
            pl.BlockSpec((ts, d_llm), lambda i: (i, 0)),      # value rows (tiled)
            _const_spec((HE, d_llm)), _const_spec((1, HE)),   # k projection
            _const_spec((HE, d_llm)), _const_spec((1, HE)),   # v projection
        ],
        out_specs=(pl.BlockSpec((ts, HE), lambda i: (i, 0)),
                   pl.BlockSpec((ts, HE), lambda i: (i, 0))),
        compiler_params=pltpu.CompilerParams(
            dimension_semantics=("parallel",),
            vmem_limit_bytes=_VMEM_LIMIT),
    )(src, val,
      params['k_w'].astype(bf16), params['k_b'].reshape(1, HE).astype(f32),
      params['v_w'].astype(bf16), params['v_b'].reshape(1, HE).astype(f32))

    if S_pad != S:   # drop padded source rows so the softmax never attends to them
        k, v = k[:S], v[:S]

    # Fold the 1/sqrt(E) score scale into the query weights/bias once.
    scale = 1.0 / float(np.sqrt(E))
    q_w = (params['q_w'] * scale).astype(bf16)
    q_b = (params['q_b'] * scale).reshape(1, HE).astype(f32)

    # ---- 2) fused per-row-tile attention + output projection ------------------------
    M = B * L
    x = target_embedding.reshape(M, d_model).astype(bf16)
    if M <= block_m:
        tm = _round_up(M, 16)                                 # bf16 sublane tile = 16
        if M >= 32:                                           # >=2 grid steps for v7x megacore
            tm = _round_up(-(-M // 2), 16)
    else:
        tm = block_m
    M_pad = _round_up(M, tm)
    if M_pad != M:
        x = jnp.pad(x, ((0, M_pad - M), (0, 0)))

    kernel = functools.partial(_attention_out_kernel, n_heads=n_heads, head_dim=E)
    out = pl.pallas_call(
        kernel,
        out_shape=jax.ShapeDtypeStruct((M_pad, d_llm), out_dtype),
        grid=(M_pad // tm,),
        in_specs=[
            pl.BlockSpec((tm, d_model), lambda i: (i, 0)),    # target rows (tiled)
            _const_spec((S, HE)),                             # precomputed K (resident)
            _const_spec((S, HE)),                             # precomputed V (resident)
            _const_spec((HE, d_model)), _const_spec((1, HE)), # scaled q projection
            _const_spec((d_llm, HE)), _const_spec((1, d_llm)),# out projection
        ],
        out_specs=pl.BlockSpec((tm, d_llm), lambda i: (i, 0)),
        scratch_shapes=[pltpu.VMEM((tm, HE), bf16)],          # head-concat scratch
        compiler_params=pltpu.CompilerParams(
            dimension_semantics=("parallel",),
            vmem_limit_bytes=_VMEM_LIMIT),
    )(x, k, v, q_w, q_b,
      params['o_w'].astype(bf16), params['o_b'].reshape(1, d_llm).astype(f32))

    return out[:M].reshape(B, L, d_llm)


# --------------------------------------------------------------------------------------
# Plain-JAX f32 reference (mirrors the PyTorch module, dropout in eval mode)
# --------------------------------------------------------------------------------------
def reprogramming_layer_reference(params, target, source, value, n_heads):
    B, L, _ = target.shape
    S, _ = source.shape
    H = n_heads
    q = target @ params['q_w'].T + params['q_b']              # (B, L, H*E)
    k = source @ params['k_w'].T + params['k_b']              # (S, H*E)
    v = value @ params['v_w'].T + params['v_b']               # (S, H*E)
    E = q.shape[-1] // H
    q = q.reshape(B, L, H, E)
    k = k.reshape(S, H, E)
    v = v.reshape(S, H, E)
    scores = jnp.einsum('blhe,she->bhls', q, k)
    A = jax.nn.softmax(scores / np.sqrt(E), axis=-1)
    out = jnp.einsum('bhls,she->blhe', A, v).reshape(B, L, H * E)
    return out @ params['o_w'].T + params['o_b']


if __name__ == "__main__":
    # Small shapes consistent with ReprogrammingLayer(d_model, n_heads, d_keys, d_llm)
    d_model, n_heads, d_keys, d_llm = 32, 4, 32, 256
    B, L, S = 2, 64, 200                                      # S exercises the padding path
    HE = d_keys * n_heads                                     # 128 -> lane-dense head concat

    key = jax.random.PRNGKey(0)
    ks = jax.random.split(key, 10)

    def lin(kw, kb, out_dim, in_dim):                         # PyTorch nn.Linear default init
        bound = 1.0 / float(np.sqrt(in_dim))
        w = jax.random.uniform(kw, (out_dim, in_dim), jnp.float32, -bound, bound)
        b = jax.random.uniform(kb, (out_dim,), jnp.float32, -bound, bound)
        return w, b

    params = {}
    params['q_w'], params['q_b'] = lin(ks[0], ks[1], HE, d_model)
    params['k_w'], params['k_b'] = lin(ks[2], ks[3], HE, d_llm)
    params['v_w'], params['v_b'] = lin(ks[4], ks[5], HE, d_llm)
    params['o_w'], params['o_b'] = lin(ks[6], ks[7], d_llm, HE)

    target = jax.random.normal(ks[8], (B, L, d_model), jnp.float32)
    source = jax.random.normal(ks[9], (S, d_llm), jnp.float32)
    value = source        # OKGLLM calls the layer with source_embeddings for both

    out = reprogramming_layer(params, target, source, value, n_heads)
    out = jax.block_until_ready(out)
    assert out.shape == (B, L, d_llm)

    ref = reprogramming_layer_reference(params, target, source, value, n_heads)
    err = float(jnp.max(jnp.abs(out.astype(jnp.float32) - ref)) /
                (jnp.max(jnp.abs(ref)) + 1e-6))
    assert err < 0.1, f"numerical mismatch vs reference: normalized max err = {err}"

    print("KERNEL_OK")
</pallas_src>

<mosaic_0001>
module attributes {stable_mosaic.version = 11 : i64} {
  func.func @_kv_projection_kernel(%arg0: i32, %arg1: memref<208x256xbf16, #tpu.memory_space<vmem>>, %arg2: memref<208x256xbf16, #tpu.memory_space<vmem>>, %arg3: memref<128x256xbf16, #tpu.memory_space<vmem>>, %arg4: memref<1x128xf32, #tpu.memory_space<vmem>>, %arg5: memref<128x256xbf16, #tpu.memory_space<vmem>>, %arg6: memref<1x128xf32, #tpu.memory_space<vmem>>, %arg7: memref<208x128xbf16, #tpu.memory_space<vmem>>, %arg8: memref<208x128xbf16, #tpu.memory_space<vmem>>) attributes {dimension_semantics = [#tpu.dimension_semantics<parallel>], iteration_bounds = array<i64: 1>, scalar_prefetch = 0 : i64, scratch_operands = 0 : i64, tpu.core_type = #tpu.core_type<tc>, window_params = [{transform_indices = @transform_0, window_bounds = array<i64: 208, 256>}, {transform_indices = @transform_1, window_bounds = array<i64: 208, 256>}, {pipeline_mode = #tpu.pipeline_mode<synchronous>, transform_indices = @transform_2, window_bounds = array<i64: 128, 256>}, {pipeline_mode = #tpu.pipeline_mode<synchronous>, transform_indices = @transform_3, window_bounds = array<i64: 1, 128>}, {pipeline_mode = #tpu.pipeline_mode<synchronous>, transform_indices = @transform_4, window_bounds = array<i64: 128, 256>}, {pipeline_mode = #tpu.pipeline_mode<synchronous>, transform_indices = @transform_5, window_bounds = array<i64: 1, 128>}, {transform_indices = @transform_6, window_bounds = array<i64: 208, 128>}, {transform_indices = @transform_7, window_bounds = array<i64: 208, 128>}]} {
    %c0 = arith.constant 0 : index
    %c0_0 = arith.constant 0 : index
    %0 = vector.load %arg1[%c0, %c0_0] : memref<208x256xbf16, #tpu.memory_space<vmem>>, vector<208x256xbf16>
    %c0_1 = arith.constant 0 : index
    %c0_2 = arith.constant 0 : index
    %1 = vector.load %arg3[%c0_1, %c0_2] : memref<128x256xbf16, #tpu.memory_space<vmem>>, vector<128x256xbf16>
    %cst = arith.constant dense<0.000000e+00> : vector<208x128xf32>
    %2 = tpu.matmul %0, %1, %cst {dimension_numbers = #tpu.dot_dimension_numbers<[1], [1], [0], [0], [0, 0, 1, 0], [], []>} : vector<208x256xbf16>, vector<128x256xbf16>, vector<208x128xf32> -> vector<208x128xf32>
    %c0_3 = arith.constant 0 : index
    %c0_4 = arith.constant 0 : index
    %3 = vector.load %arg4[%c0_3, %c0_4] : memref<1x128xf32, #tpu.memory_space<vmem>>, vector<1x128xf32>
    %4 = vector.broadcast %3 : vector<1x128xf32> to vector<208x128xf32>
    %5 = arith.addf %2, %4 : vector<208x128xf32>
    %c0_5 = arith.constant 0 : index
    %c0_6 = arith.constant 0 : index
    %6 = vector.load %arg2[%c0_5, %c0_6] : memref<208x256xbf16, #tpu.memory_space<vmem>>, vector<208x256xbf16>
    %c0_7 = arith.constant 0 : index
    %c0_8 = arith.constant 0 : index
    %7 = vector.load %arg5[%c0_7, %c0_8] : memref<128x256xbf16, #tpu.memory_space<vmem>>, vector<128x256xbf16>
    %cst_9 = arith.constant dense<0.000000e+00> : vector<208x128xf32>
    %8 = tpu.matmul %6, %7, %cst_9 {dimension_numbers = #tpu.dot_dimension_numbers<[1], [1], [0], [0], [0, 0, 1, 0], [], []>} : vector<208x256xbf16>, vector<128x256xbf16>, vector<208x128xf32> -> vector<208x128xf32>
    %c0_10 = arith.constant 0 : index
    %c0_11 = arith.constant 0 : index
    %9 = vector.load %arg6[%c0_10, %c0_11] : memref<1x128xf32, #tpu.memory_space<vmem>>, vector<1x128xf32>
    %10 = vector.broadcast %9 : vector<1x128xf32> to vector<208x128xf32>
    %11 = arith.addf %8, %10 : vector<208x128xf32>
    %12 = arith.truncf %5 : vector<208x128xf32> to vector<208x128xbf16>
    %c0_12 = arith.constant 0 : index
    %c0_13 = arith.constant 0 : index
    %13 = vector.load %arg7[%c0_12, %c0_13] : memref<208x128xbf16, #tpu.memory_space<vmem>>, vector<208x128xbf16>
    tpu.vector_store %arg7[%c0_12, %c0_13], %12 {strides = array<i32>} : memref<208x128xbf16, #tpu.memory_space<vmem>>, vector<208x128xbf16>,
    %14 = arith.truncf %11 : vector<208x128xf32> to vector<208x128xbf16>
    %c0_14 = arith.constant 0 : index
    %c0_15 = arith.constant 0 : index
    %15 = vector.load %arg8[%c0_14, %c0_15] : memref<208x128xbf16, #tpu.memory_space<vmem>>, vector<208x128xbf16>
    tpu.vector_store %arg8[%c0_14, %c0_15], %14 {strides = array<i32>} : memref<208x128xbf16, #tpu.memory_space<vmem>>, vector<208x128xbf16>,
    return
  }
  func.func @transform_0(%arg0: i32) -> (i32, i32) {
    %c0_i32 = arith.constant 0 : i32
    %c0_i32_0 = arith.constant 0 : i32
    return %arg0, %c0_i32 : i32, i32
  }
  func.func @transform_1(%arg0: i32) -> (i32, i32) {
    %c0_i32 = arith.constant 0 : i32
    %c0_i32_0 = arith.constant 0 : i32
    return %arg0, %c0_i32 : i32, i32
  }
  func.func @transform_2(%arg0: i32) -> (i32, i32) {
    %c0_i32 = arith.constant 0 : i32
    %c0_i32_0 = arith.constant 0 : i32
    %c0_i32_1 = arith.constant 0 : i32
    return %c0_i32, %c0_i32_0 : i32, i32
  }
  func.func @transform_3(%arg0: i32) -> (i32, i32) {
    %c0_i32 = arith.constant 0 : i32
    %c0_i32_0 = arith.constant 0 : i32
    %c0_i32_1 = arith.constant 0 : i32
    return %c0_i32, %c0_i32_0 : i32, i32
  }
  func.func @transform_4(%arg0: i32) -> (i32, i32) {
    %c0_i32 = arith.constant 0 : i32
    %c0_i32_0 = arith.constant 0 : i32
    %c0_i32_1 = arith.constant 0 : i32
    return %c0_i32, %c0_i32_0 : i32, i32
  }
  func.func @transform_5(%arg0: i32) -> (i32, i32) {
    %c0_i32 = arith.constant 0 : i32
    %c0_i32_0 = arith.constant 0 : i32
    %c0_i32_1 = arith.constant 0 : i32
    return %c0_i32, %c0_i32_0 : i32, i32
  }
  func.func @transform_6(%arg0: i32) -> (i32, i32) {
    %c0_i32 = arith.constant 0 : i32
    %c0_i32_0 = arith.constant 0 : i32
    return %arg0, %c0_i32 : i32, i32
  }
  func.func @transform_7(%arg0: i32) -> (i32, i32) {
    %c0_i32 = arith.constant 0 : i32
    %c0_i32_0 = arith.constant 0 : i32
    return %arg0, %c0_i32 : i32, i32
  }
}

</mosaic_0001>

<bundles_post_ra>
// kernel: tpu_custom_call.1
= control target key start
LH: loop header
LB: loop body
LE: loop exit
PB: predicated region body
PF: predicated region fallthrough
CT: control target
= control target key end

     0   :  { %13 = vsyncpa [#allocation3], 0  ;;  %s1922_s0 = inlined_call_operand.hbm [shape: bf16[208,256], index: 0, kind: input, shape index: {}]   ;;  %s1923_s1 = inlined_call_operand.hbm [shape: bf16[208,256], index: 1, kind: input, shape index: {}]   ;;  %s1924_s2 = inlined_call_operand.hbm [shape: bf16[128,256], index: 2, kind: input, shape index: {}]   ;;  %s1925_s3 = inlined_call_operand.vmem [shape: f32[1,128], index: 3, kind: input, shape index: {}]   ;;  %s1926_s4 = inlined_call_operand.hbm [shape: bf16[128,256], index: 4, kind: input, shape index: {}]   ;;  %s1927_s5 = inlined_call_operand.vmem [shape: f32[1,128], index: 5, kind: input, shape index: {}]   ;;  %s1928_s6 = inlined_call_operand.hbm [shape: bf16[208,128], index: 6, kind: output, shape index: {0}]   ;;  %s1929_s7 = inlined_call_operand.hbm [shape: bf16[208,128], index: 7, kind: output, shape index: {1}]  }
   0x1   :  { %14 = vsyncpa [#allocation6], 0 }
   0x2   :  { %15 = vsyncpa [#allocation9], 0 }
   0x3   :  { %16 = vsyncpa [#allocation4], 0 }
   0x4   :  { %17 = vsyncpa [#allocation12], 0  ;;  %s1780_s24 = smov [#allocation5]   ;;  %s1781_s26 = smov [#allocation2]  }
   0x5   :  { %s35_s25 = sshll.u32 %s1780_s24, 4  ;;  %s23_s27 = sshll.u32 %s1781_s26, 4  ;;  %s36_s25 = int_to_ptr.vmem [resolvable:$true] %s35_s25  ;;  %s24_s27 = int_to_ptr.vmem [resolvable:$true] %s23_s27 }
   0x6   :  { %s1658_s28 = scalar_lea.vmem %s36_s25, 3328  ;;  %p1663_p1 = scmp.lt.s32.totalorder %s36_s25, %s36_s25 }
   0x7   :  { %p1659_p0 = scmp.ne.s32.totalorder %s36_s25, %s1658_s28  ;;  %p1664_p2 = scmp.lt.s32.totalorder %s1658_s28, %s1658_s28 }
   0x9   :  { %p1665_p3 = por %p1664_p2, %p1663_p1 }
   0xb   :  { %p1666_p4 = pnand %p1665_p3, %p1659_p0 }
   0xd   :  { %1669 = shalt.err (!%p1666_p4)
}
   0xe   :  { %s1782_s29 = smov 128   ;;  %s1783_s30 = smov 8  }
   0xf   :  { %41 = dma.hbm_to_vmem [thread:$0]  %s1923_s1, 3328, %s36_s25, [#allocation6], %s1782_s29, %s1782_s29, %s1783_s30  }
  0x10   :  { %s1678_s10 = scalar_lea.vmem %s24_s27, 3328  ;;  %p1683_p6 = scmp.lt.s32.totalorder %s24_s27, %s24_s27 }
  0x11   :  { %p1679_p5 = scmp.ne.s32.totalorder %s24_s27, %s1678_s10  ;;  %p1684_p7 = scmp.lt.s32.totalorder %s1678_s10, %s1678_s10 }
  0x13   :  { %p1685_p8 = por %p1684_p7, %p1683_p6 }
  0x15   :  { %p1686_p9 = pnand %p1685_p8, %p1679_p5 }
  0x17   :  { %1689 = shalt.err (!%p1686_p9)
}
  0x18   :  { %29 = dma.hbm_to_vmem [thread:$0]  %s1922_s0, 3328, %s24_s27, [#allocation3], %s1782_s29, %s1782_s29, %s1783_s30  }
  0x19   :  { %s1784_s13 = smov [#allocation7]   ;;  %s1785_s15 = smov [#allocation8]  }
  0x1a   :  { %s47_s14 = sshll.u32 %s1784_s13, 4  ;;  %s61_s16 = sshll.u32 %s1785_s15, 4  ;;  %s48_s14 = int_to_ptr.vmem [resolvable:$true] %s47_s14  ;;  %s62_s16 = int_to_ptr.vmem [resolvable:$true] %s61_s16 }
  0x1b   :  { %s1698_s1 = scalar_lea.vmem %s48_s14, 2048  ;;  %p1703_p11 = scmp.lt.s32.totalorder %s48_s14, %s48_s14 }
  0x1c   :  { %p1699_p10 = scmp.ne.s32.totalorder %s48_s14, %s1698_s1  ;;  %p1704_p12 = scmp.lt.s32.totalorder %s1698_s1, %s1698_s1 }
  0x1e   :  { %p1705_p13 = por %p1704_p12, %p1703_p11 }
  0x20   :  { %p1706_p0 = pnand %p1705_p13, %p1699_p10 }
  0x22   :  { %1709 = shalt.err (!%p1706_p0)
}
  0x23   :  { %53 = dma.hbm_to_vmem [thread:$0]  %s1924_s2, 2048, %s48_s14, [#allocation6], %s1782_s29, %s1782_s29, %s1783_s30  }
  0x24   :  { %s1718_s0 = scalar_lea.vmem %s62_s16, 2048  ;;  %p1723_p2 = scmp.lt.s32.totalorder %s62_s16, %s62_s16 }
  0x25   :  { %p1719_p1 = scmp.ne.s32.totalorder %s62_s16, %s1718_s0  ;;  %p1724_p3 = scmp.lt.s32.totalorder %s1718_s0, %s1718_s0 }
  0x27   :  { %p1725_p4 = por %p1724_p3, %p1723_p2 }
  0x29   :  { %p1726_p5 = pnand %p1725_p4, %p1719_p1 }
  0x2b   :  { %1729 = shalt.err (!%p1726_p5)
}
  0x2c   :  { %67 = dma.hbm_to_vmem [thread:$0]  %s1926_s4, 2048, %s62_s16, [#allocation9], %s1782_s29, %s1782_s29, %s1783_s30  }
  0x2d   :  { %1770 = dma.done.wait [#allocation3], 3328  }
  0x2e   :  { %1771 = vsyncadd [#allocation3], 4294963968 }
  0x2f   :  { %1772 = dma.done.wait [#allocation6], 5376  }
  0x30   :  { %1773 = vsyncadd [#allocation6], 4294961920 }
  0x31   :  { %1774 = dma.done.wait [#allocation9], 2048  }
  0x32   :  { %1775 = vsyncadd [#allocation9], 4294965248  ;;  %v1524_v0 = vld [vmem:[#allocation7 + $0x74] ss:$8 sps:$4 sm:$0xff]   ;;  %v1528_v2 = vld [vmem:[#allocation7 + $0x70] ss:$8 sps:$4 sm:$0xff]  }
  0x33   :  { %v1526_v1 = vld [vmem:[#allocation8 + $0x74] ss:$8 sps:$4 sm:$0xff]   ;;  %342 = vmatprep.subr.bf16.mxu0 %v1524_v0  ;;  %v1529_v3 = vld [vmem:[#allocation8 + $0x70] ss:$8 sps:$4 sm:$0xff]   ;;  %v1530_v4 = vld [vmem:[#allocation7 + $0x64] ss:$8 sps:$4 sm:$0xff]  }
  0x34   :  { %738 = vmatprep.subr.bf16.mxu1 %v1526_v1  ;;  %343 = vmatpush1.bf16.xpose.msra.mxu0 %v1528_v2  ;;  %v1532_v5 = vld [vmem:[#allocation8 + $0x64] ss:$8 sps:$4 sm:$0xff]   ;;  %v1534_v6 = vld [vmem:[#allocation7 + $0x60] ss:$8 sps:$4 sm:$0xff]   ;;  %v1536_v8 = vld [vmem:[#allocation7 + $0x54] ss:$8 sps:$4 sm:$0xff]  }
  0x35   :  { %739 = vmatpush1.bf16.xpose.msra.mxu1 %v1529_v3  ;;  %344 = vmatprep.subr.bf16.mxu0 %v1530_v4  ;;  %v1535_v7 = vld [vmem:[#allocation8 + $0x60] ss:$8 sps:$4 sm:$0xff]   ;;  %v1538_v9 = vld [vmem:[#allocation8 + $0x54] ss:$8 sps:$4 sm:$0xff]   ;;  %v1540_v10 = vld [vmem:[#allocation7 + $0x50] ss:$8 sps:$4 sm:$0xff]  }
  0x36   :  { %740 = vmatprep.subr.bf16.mxu1 %v1532_v5  ;;  %v1541_v11 = vld [vmem:[#allocation8 + $0x50] ss:$8 sps:$4 sm:$0xff]   ;;  %v1542_v12 = vld [vmem:[#allocation7 + $0x44] ss:$8 sps:$4 sm:$0xff]   ;;  %v1546_v14 = vld [vmem:[#allocation7 + $0x40] ss:$8 sps:$4 sm:$0xff]  }
  0x37   :  { %v1544_v13 = vld [vmem:[#allocation8 + $0x44] ss:$8 sps:$4 sm:$0xff]   ;;  %v1547_v16 = vld [vmem:[#allocation8 + $0x40] ss:$8 sps:$4 sm:$0xff]   ;;  %v1577_v17 = vld [vmem:[#allocation5 + $0x4] ss:$8 sps:$4 sm:$0xff]  }
  0x38   :  { %v1574_v15 = vld [vmem:[#allocation2 + $0x4] ss:$8 sps:$4 sm:$0xff]   ;;  %v1548_v18 = vld [vmem:[#allocation7 + $0x34] ss:$8 sps:$4 sm:$0xff]   ;;  %770 = vmatprep.mubr.bf16.mxu1 %v1577_v17  ;;  %v1552_v20 = vld [vmem:[#allocation7 + $0x30] ss:$8 sps:$4 sm:$0xff]  }
  0x39   :  { %374 = vmatprep.mubr.bf16.mxu0 %v1574_v15  ;;  %v1550_v19 = vld [vmem:[#allocation8 + $0x34] ss:$8 sps:$4 sm:$0xff]   ;;  %v1553_v21 = vld [vmem:[#allocation8 + $0x30] ss:$8 sps:$4 sm:$0xff]   ;;  %v1554_v22 = vld [vmem:[#allocation7 + $0x24] ss:$8 sps:$4 sm:$0xff]  }
  0x3a   :  { %v1556_v23 = vld [vmem:[#allocation8 + $0x24] ss:$8 sps:$4 sm:$0xff]   ;;  %v1558_v24 = vld [vmem:[#allocation7 + $0x20] ss:$8 sps:$4 sm:$0xff]   ;;  %v1560_v26 = vld [vmem:[#allocation7 + $0x14] ss:$8 sps:$4 sm:$0xff]  }
  0x3b   :  { %v1559_v25 = vld [vmem:[#allocation8 + $0x20] ss:$8 sps:$4 sm:$0xff]   ;;  %v1562_v27 = vld [vmem:[#allocation8 + $0x14] ss:$8 sps:$4 sm:$0xff]   ;;  %v1564_v28 = vld [vmem:[#allocation7 + $0x10] ss:$8 sps:$4 sm:$0xff]  }
  0x3c   :  { %345 = vmatpush1.bf16.xpose.msra.mxu0 %v1534_v6  ;;  %v1565_v29 = vld [vmem:[#allocation8 + $0x10] ss:$8 sps:$4 sm:$0xff]   ;;  %v1566_v30 = vld [vmem:[#allocation7 + $0x4] ss:$8 sps:$4 sm:$0xff]   ;;  %v1570_v32 = vld [vmem:[#allocation7] ss:$8 sps:$4 sm:$0xff]  }
  0x3d   :  { %741 = vmatpush1.bf16.xpose.msra.mxu1 %v1535_v7  ;;  %346 = vmatprep.subr.bf16.mxu0 %v1536_v8  ;;  %v1568_v31 = vld [vmem:[#allocation8 + $0x4] ss:$8 sps:$4 sm:$0xff]   ;;  %v1571_v33 = vld [vmem:[#allocation8] ss:$8 sps:$4 sm:$0xff]   ;;  %v1575_v35 = vld [vmem:[#allocation5] ss:$8 sps:$4 sm:$0xff]  }
  0x3e   :  { %742 = vmatprep.subr.bf16.mxu1 %v1538_v9  ;;  %v1572_v34 = vld [vmem:[#allocation2] ss:$8 sps:$4 sm:$0xff]   ;;  %v1578_v36 = vld [vmem:[#allocation2 + $0x14] ss:$8 sps:$4 sm:$0xff]   ;;  %v1580_v37 = vld [vmem:[#allocation5 + $0x14] ss:$8 sps:$4 sm:$0xff]  }
  0x3f   :  { %v1582_v38 = vld [vmem:[#allocation2 + $0x10] ss:$8 sps:$4 sm:$0xff]   ;;  %v1583_v39 = vld [vmem:[#allocation5 + $0x10] ss:$8 sps:$4 sm:$0xff]   ;;  %v1584_v40 = vld [vmem:[#allocation2 + $0x24] ss:$8 sps:$4 sm:$0xff]  }
  0x40   :  { %v1586_v41 = vld [vmem:[#allocation5 + $0x24] ss:$8 sps:$4 sm:$0xff]   ;;  %v1588_v42 = vld [vmem:[#allocation2 + $0x20] ss:$8 sps:$4 sm:$0xff]   ;;  %v1589_v43 = vld [vmem:[#allocation5 + $0x20] ss:$8 sps:$4 sm:$0xff]  }
  0x41   :  { %v1590_v44 = vld [vmem:[#allocation2 + $0x34] ss:$8 sps:$4 sm:$0xff]   ;;  %v1592_v45 = vld [vmem:[#allocation5 + $0x34] ss:$8 sps:$4 sm:$0xff]   ;;  %v1594_v46 = vld [vmem:[#allocation2 + $0x30] ss:$8 sps:$4 sm:$0xff]  }
  0x42   :  { %v1595_v47 = vld [vmem:[#allocation5 + $0x30] ss:$8 sps:$4 sm:$0xff]   ;;  %v1596_v48 = vld [vmem:[#allocation2 + $0x44] ss:$8 sps:$4 sm:$0xff]   ;;  %v1598_v49 = vld [vmem:[#allocation5 + $0x44] ss:$8 sps:$4 sm:$0xff]  }
  0x43   :  { %v1600_v50 = vld [vmem:[#allocation2 + $0x40] ss:$8 sps:$4 sm:$0xff]   ;;  %v1601_v51 = vld [vmem:[#allocation5 + $0x40] ss:$8 sps:$4 sm:$0xff]   ;;  %v1602_v52 = vld [vmem:[#allocation2 + $0x54] ss:$8 sps:$4 sm:$0xff]  }
  0x44   :  { %347 = vmatpush1.bf16.xpose.msra.mxu0 %v1540_v10  ;;  %v1604_v53 = vld [vmem:[#allocation5 + $0x54] ss:$8 sps:$4 sm:$0xff]   ;;  %v1606_v54 = vld [vmem:[#allocation2 + $0x50] ss:$8 sps:$4 sm:$0xff]   ;;  %v1607_v55 = vld [vmem:[#allocation5 + $0x50] ss:$8 sps:$4 sm:$0xff]  }
  0x45   :  { %743 = vmatpush1.bf16.xpose.msra.mxu1 %v1541_v11  ;;  %348 = vmatprep.subr.bf16.mxu0 %v1542_v12  ;;  %v1608_v56 = vld [vmem:[#allocation2 + $0x64] ss:$8 sps:$4 sm:$0xff]   ;;  %v1610_v57 = vld [vmem:[#allocation5 + $0x64] ss:$8 sps:$4 sm:$0xff]   ;;  %v1612_v58 = vld [vmem:[#allocation2 + $0x60] ss:$8 sps:$4 sm:$0xff]  }
  0x46   :  { %744 = vmatprep.subr.bf16.mxu1 %v1544_v13  ;;  %v1613_v59 = vld [vmem:[#allocation5 + $0x60] ss:$8 sps:$4 sm:$0xff]   ;;  %v1614_v60 = vld [vmem:[#allocation2 + $0x74] ss:$8 sps:$4 sm:$0xff]   ;;  %v1616_v61 = vld [vmem:[#allocation5 + $0x74] ss:$8 sps:$4 sm:$0xff]  }
  0x47   :  { %v1618_v62 = vld [vmem:[#allocation2 + $0x70] ss:$8 sps:$4 sm:$0xff]   ;;  %v1619_v63 = vld [vmem:[#allocation5 + $0x70] ss:$8 sps:$4 sm:$0xff]   ;;  %v1620_v0 = vld [vmem:[#allocation2 + $0x84] ss:$8 sps:$4 sm:$0xff]  }
  0x48   :  { %v1622_v1 = vld [vmem:[#allocation5 + $0x84] ss:$8 sps:$4 sm:$0xff]   ;;  %v1624_v2 = vld [vmem:[#allocation2 + $0x80] ss:$8 sps:$4 sm:$0xff]   ;;  %v1625_v3 = vld [vmem:[#allocation5 + $0x80] ss:$8 sps:$4 sm:$0xff]  }
  0x49   :  { %v1626_v4 = vld [vmem:[#allocation2 + $0x94] ss:$8 sps:$4 sm:$0xff]   ;;  %v1628_v5 = vld [vmem:[#allocation5 + $0x94] ss:$8 sps:$4 sm:$0xff]   ;;  %v1630_v6 = vld [vmem:[#allocation2 + $0x90] ss:$8 sps:$4 sm:$0xff]  }
  0x4a   :  { %v1631_v7 = vld [vmem:[#allocation5 + $0x90] ss:$8 sps:$4 sm:$0xff]   ;;  %v1632_v8 = vld [vmem:[#allocation2 + $0xa4] ss:$8 sps:$4 sm:$0xff]   ;;  %v1634_v9 = vld [vmem:[#allocation5 + $0xa4] ss:$8 sps:$4 sm:$0xff]  }
  0x4b   :  { %v1636_v10 = vld [vmem:[#allocation2 + $0xa0] ss:$8 sps:$4 sm:$0xff]   ;;  %v1637_v11 = vld [vmem:[#allocation5 + $0xa0] ss:$8 sps:$4 sm:$0xff]   ;;  %v1638_v12 = vld [vmem:[#allocation2 + $0xb4] ss:$8 sps:$4 sm:$0xff]  }
  0x4c   :  { %349 = vmatpush1.bf16.xpose.msra.mxu0 %v1546_v14  ;;  %v1640_v13 = vld [vmem:[#allocation5 + $0xb4] ss:$8 sps:$4 sm:$0xff]   ;;  %v1642_v14 = vld [vmem:[#allocation2 + $0xb0] ss:$8 sps:$4 sm:$0xff]   ;;  %v1643_v15 = vld [vmem:[#allocation5 + $0xb0] ss:$8 sps:$4 sm:$0xff]  }
  0x4d   :  { %745 = vmatpush1.bf16.xpose.msra.mxu1 %v1547_v16  ;;  %350 = vmatprep.subr.bf16.mxu0 %v1548_v18  ;;  %v1644_v16 = vld [vmem:[#allocation2 + $0xc4] ss:$8 sps:$4 sm:$0xff]   ;;  %v1646_v17 = vld [vmem:[#allocation5 + $0xc4] ss:$8 sps:$4 sm:$0xff]   ;;  %v1648_v18 = vld [vmem:[#allocation2 + $0xc0] ss:$8 sps:$4 sm:$0xff]  }
  0x4e   :  { %746 = vmatprep.subr.bf16.mxu1 %v1550_v19  ;;  %v1649_v19 = vld [vmem:[#allocation5 + $0xc0] ss:$8 sps:$4 sm:$0xff]   ;;  %s1787_s23 = smov [#allocation11]  }
  0x4f   :  { %s1152_s24 = sshll.u32 %s1787_s23, 4  ;;  %s1153_s24 = int_to_ptr.vmem [resolvable:$true] %s1152_s24 }
  0x54   :  { %351 = vmatpush1.bf16.xpose.msra.mxu0 %v1552_v20 }
  0x55   :  { %747 = vmatpush1.bf16.xpose.msra.mxu1 %v1553_v21  ;;  %352 = vmatprep.subr.bf16.mxu0 %v1554_v22  ;;  %v1857_v22 = vld [vmem:[%s1925_s3] ss:$0 sm:$0xff]  ;;  %s1786_s3 = smov [#allocation10]  }
  0x56   :  { %748 = vmatprep.subr.bf16.mxu1 %v1556_v23  ;;  %v1862_v23 = vld [vmem:[%s1927_s5] ss:$0 sm:$0xff]  ;;  %s1140_s5 = sshll.u32 %s1786_s3, 4  ;;  %s1141_s5 = int_to_ptr.vmem [resolvable:$true] %s1140_s5 }
  0x57   :  { %s1730_s25 = scalar_lea.vmem %s1141_s5, 1664  ;;  %p1735_p7 = scmp.lt.s32.totalorder %s1141_s5, %s1141_s5 }
  0x58   :  { %p1731_p6 = scmp.ne.s32.totalorder %s1141_s5, %s1730_s25  ;;  %p1736_p8 = scmp.lt.s32.totalorder %s1730_s25, %s1730_s25 }
  0x5a   :  { %p1737_p9 = por %p1736_p8, %p1735_p7 }
  0x5c   :  { %353 = vmatpush1.bf16.xpose.msra.mxu0 %v1558_v24  ;;  %p1738_p10 = pnand %p1737_p9, %p1731_p6 }
  0x5d   :  { %749 = vmatpush1.bf16.xpose.msra.mxu1 %v1559_v25  ;;  %354 = vmatprep.subr.bf16.mxu0 %v1560_v26 }
  0x5e   :  { %750 = vmatprep.subr.bf16.mxu1 %v1562_v27 }
  0x64   :  { %355 = vmatpush1.bf16.xpose.msra.mxu0 %v1564_v28 }
  0x65   :  { %751 = vmatpush1.bf16.xpose.msra.mxu1 %v1565_v29  ;;  %356 = vmatprep.subr.bf16.mxu0 %v1566_v30 }
  0x66   :  { %752 = vmatprep.subr.bf16.mxu1 %v1568_v31 }
  0x6c   :  { %357 = vmatpush1.bf16.xpose.msra.mxu0 %v1570_v32 }
  0x6d   :  { %753 = vmatpush1.bf16.xpose.msra.mxu1 %v1571_v33 }
  0x73   :  { %375 = vmatmul.mubr.bf16.vlgmr.msra.gmra.mxu0 %v1572_v34 }
  0x74   :  { %771 = vmatmul.mubr.bf16.vlgmr.msra.gmra.mxu1 %v1575_v35  ;;  %382 = vmatprep.mubr.bf16.mxu0 %v1578_v36 }
  0x75   :  { %778 = vmatprep.mubr.bf16.mxu1 %v1580_v37 }
  0x7b   :  { %383 = vmatmul.mubr.bf16.gmra.mxu0 %v1582_v38 }
  0x7c   :  { %779 = vmatmul.mubr.bf16.gmra.mxu1 %v1583_v39  ;;  %390 = vmatprep.mubr.bf16.mxu0 %v1584_v40 }
  0x7d   :  { %786 = vmatprep.mubr.bf16.mxu1 %v1586_v41 }
  0x83   :  { %391 = vmatmul.mubr.bf16.gmra.mxu0 %v1588_v42 }
  0x84   :  { %787 = vmatmul.mubr.bf16.gmra.mxu1 %v1589_v43  ;;  %398 = vmatprep.mubr.bf16.mxu0 %v1590_v44 }
  0x85   :  { %794 = vmatprep.mubr.bf16.mxu1 %v1592_v45 }
  0x8b   :  { %399 = vmatmul.mubr.bf16.gmra.mxu0 %v1594_v46 }
  0x8c   :  { %795 = vmatmul.mubr.bf16.gmra.mxu1 %v1595_v47  ;;  %406 = vmatprep.mubr.bf16.mxu0 %v1596_v48 }
  0x8d   :  { %802 = vmatprep.mubr.bf16.mxu1 %v1598_v49 }
  0x93   :  { %407 = vmatmul.mubr.bf16.gmra.mxu0 %v1600_v50 }
  0x94   :  { %803 = vmatmul.mubr.bf16.gmra.mxu1 %v1601_v51  ;;  %414 = vmatprep.mubr.bf16.mxu0 %v1602_v52 }
  0x95   :  { %810 = vmatprep.mubr.bf16.mxu1 %v1604_v53 }
  0x9b   :  { %415 = vmatmul.mubr.bf16.gmra.mxu0 %v1606_v54 }
  0x9c   :  { %811 = vmatmul.mubr.bf16.gmra.mxu1 %v1607_v55  ;;  %422 = vmatprep.mubr.bf16.mxu0 %v1608_v56 }
  0x9d   :  { %818 = vmatprep.mubr.bf16.mxu1 %v1610_v57 }
  0xa3   :  { %423 = vmatmul.mubr.bf16.gmra.mxu0 %v1612_v58 }
  0xa4   :  { %819 = vmatmul.mubr.bf16.gmra.mxu1 %v1613_v59  ;;  %430 = vmatprep.mubr.bf16.mxu0 %v1614_v60 }
  0xa5   :  { %826 = vmatprep.mubr.bf16.mxu1 %v1616_v61 }
  0xab   :  { %431 = vmatmul.mubr.bf16.gmra.mxu0 %v1618_v62 }
  0xac   :  { %827 = vmatmul.mubr.bf16.gmra.mxu1 %v1619_v63  ;;  %438 = vmatprep.mubr.bf16.mxu0 %v1620_v0 }
  0xad   :  { %834 = vmatprep.mubr.bf16.mxu1 %v1622_v1 }
  0xb3   :  { %439 = vmatmul.mubr.bf16.gmra.mxu0 %v1624_v2 }
  0xb4   :  { %835 = vmatmul.mubr.bf16.gmra.mxu1 %v1625_v3  ;;  %446 = vmatprep.mubr.bf16.mxu0 %v1626_v4 }
  0xb5   :  { %842 = vmatprep.mubr.bf16.mxu1 %v1628_v5 }
  0xbb   :  { %447 = vmatmul.mubr.bf16.gmra.mxu0 %v1630_v6 }
  0xbc   :  { %843 = vmatmul.mubr.bf16.gmra.mxu1 %v1631_v7  ;;  %454 = vmatprep.mubr.bf16.mxu0 %v1632_v8 }
  0xbd   :  { %850 = vmatprep.mubr.bf16.mxu1 %v1634_v9 }
  0xc3   :  { %455 = vmatmul.mubr.bf16.gmra.mxu0 %v1636_v10 }
  0xc4   :  { %851 = vmatmul.mubr.bf16.gmra.mxu1 %v1637_v11  ;;  %462 = vmatprep.mubr.bf16.mxu0 %v1638_v12 }
  0xc5   :  { %858 = vmatprep.mubr.bf16.mxu1 %v1640_v13 }
  0xcb   :  { %463 = vmatmul.mubr.bf16.gmra.mxu0 %v1642_v14 }
  0xcc   :  { %859 = vmatmul.mubr.bf16.gmra.mxu1 %v1643_v15  ;;  %470 = vmatprep.mubr.bf16.mxu0 %v1644_v16 }
  0xcd   :  { %866 = vmatprep.mubr.bf16.mxu1 %v1646_v17 }
  0xd3   :  { %471 = vmatmul.mubr.bf16.gmra.mxu0 %v1648_v18 }
  0xd4   :  { %867 = vmatmul.mubr.bf16.gmra.mxu1 %v1649_v19 }
 0x133   :  { %v376_v20 = vpop.f32.mrf.mxu0 }
 0x134   :  { %v772_v21 = vpop.f32.mrf.mxu1  ;;  %v377_v28 = vadd.f32 %v1857_v22, %v376_v20 }
 0x135   :  { %v378_v24 = vpop.f32.mrf.mxu0  ;;  %v773_v29 = vadd.f32 %v1862_v23, %v772_v21 }
 0x136   :  { %v774_v25 = vpop.f32.mrf.mxu1 }
 0x137   :  { %v379_v26 = vpop.f32.mrf.mxu0 }
 0x138   :  { %v775_v27 = vpop.f32.mrf.mxu1  ;;  %v380_v30 = vadd.f32 %v1857_v22, %v379_v26 }
 0x139   :  { %v776_v31 = vadd.f32 %v1862_v23, %v775_v27  ;;  %v381_v32 = vpop.f32.mrf.mxu0 }
 0x13a   :  { %v777_v33 = vpop.f32.mrf.mxu1  ;;  %v1363_v34 = vpack.c.bf16 %v380_v30, %v377_v28 }
 0x13b   :  { %v1428_v35 = vpack.c.bf16 %v776_v31, %v773_v29  ;;  %v384_v36 = vpop.f32.mrf.mxu0 }
 0x13c   :  { %v780_v37 = vpop.f32.mrf.mxu1  ;;  %1364 = vst [vmem:[#allocation10] sm:$0xff] %v1363_v34   ;;  %v385_v42 = vadd.f32 %v1857_v22, %v384_v36 }
 0x13d   :  { %1429 = vst [vmem:[#allocation11] sm:$0xff] %v1428_v35   ;;  %v386_v38 = vpop.f32.mrf.mxu0  ;;  %v781_v43 = vadd.f32 %v1862_v23, %v780_v37 }
 0x13e   :  { %v782_v39 = vpop.f32.mrf.mxu1 }
 0x13f   :  { %v387_v40 = vpop.f32.mrf.mxu0 }
 0x140   :  { %v783_v41 = vpop.f32.mrf.mxu1  ;;  %v388_v44 = vadd.f32 %v1857_v22, %v387_v40 }
 0x141   :  { %v784_v45 = vadd.f32 %v1862_v23, %v783_v41  ;;  %v389_v46 = vpop.f32.mrf.mxu0 }
 0x142   :  { %v785_v47 = vpop.f32.mrf.mxu1  ;;  %v1368_v48 = vpack.c.bf16 %v388_v44, %v385_v42 }
 0x143   :  { %v1433_v49 = vpack.c.bf16 %v784_v45, %v781_v43  ;;  %v392_v50 = vpop.f32.mrf.mxu0 }
 0x144   :  { %v788_v51 = vpop.f32.mrf.mxu1  ;;  %1490 = vst [vmem:[#allocation10 + $0x8] sm:$0xff] %v1368_v48   ;;  %v393_v56 = vadd.f32 %v1857_v22, %v392_v50 }
 0x145   :  { %1502 = vst [vmem:[#allocation11 + $0x8] sm:$0xff] %v1433_v49   ;;  %v394_v52 = vpop.f32.mrf.mxu0  ;;  %v789_v57 = vadd.f32 %v1862_v23, %v788_v51 }
 0x146   :  { %v790_v53 = vpop.f32.mrf.mxu1 }
 0x147   :  { %v395_v54 = vpop.f32.mrf.mxu0 }
 0x148   :  { %v791_v55 = vpop.f32.mrf.mxu1  ;;  %v396_v58 = vadd.f32 %v1857_v22, %v395_v54 }
 0x149   :  { %v792_v59 = vadd.f32 %v1862_v23, %v791_v55  ;;  %v397_v60 = vpop.f32.mrf.mxu0 }
 0x14a   :  { %v793_v61 = vpop.f32.mrf.mxu1  ;;  %v1373_v62 = vpack.c.bf16 %v396_v58, %v393_v56 }
 0x14b   :  { %v1438_v63 = vpack.c.bf16 %v792_v59, %v789_v57  ;;  %v400_v0 = vpop.f32.mrf.mxu0 }
 0x14c   :  { %v796_v1 = vpop.f32.mrf.mxu1  ;;  %1491 = vst [vmem:[#allocation10 + $0x10] sm:$0xff] %v1373_v62   ;;  %v401_v6 = vadd.f32 %v1857_v22, %v400_v0 }
 0x14d   :  { %1503 = vst [vmem:[#allocation11 + $0x10] sm:$0xff] %v1438_v63   ;;  %v402_v2 = vpop.f32.mrf.mxu0  ;;  %v797_v7 = vadd.f32 %v1862_v23, %v796_v1 }
 0x14e   :  { %v798_v3 = vpop.f32.mrf.mxu1 }
 0x14f   :  { %v403_v4 = vpop.f32.mrf.mxu0 }
 0x150   :  { %v799_v5 = vpop.f32.mrf.mxu1  ;;  %v404_v8 = vadd.f32 %v1857_v22, %v403_v4 }
 0x151   :  { %v800_v9 = vadd.f32 %v1862_v23, %v799_v5  ;;  %v405_v10 = vpop.f32.mrf.mxu0 }
 0x152   :  { %v801_v11 = vpop.f32.mrf.mxu1  ;;  %v1378_v12 = vpack.c.bf16 %v404_v8, %v401_v6 }
 0x153   :  { %v1443_v13 = vpack.c.bf16 %v800_v9, %v797_v7  ;;  %v408_v14 = vpop.f32.mrf.mxu0 }
 0x154   :  { %v804_v15 = vpop.f32.mrf.mxu1  ;;  %1492 = vst [vmem:[#allocation10 + $0x18] sm:$0xff] %v1378_v12   ;;  %v409_v20 = vadd.f32 %v1857_v22, %v408_v14 }
 0x155   :  { %1504 = vst [vmem:[#allocation11 + $0x18] sm:$0xff] %v1443_v13   ;;  %v410_v16 = vpop.f32.mrf.mxu0  ;;  %v805_v21 = vadd.f32 %v1862_v23, %v804_v15 }
 0x156   :  { %v806_v17 = vpop.f32.mrf.mxu1 }
 0x157   :  { %v411_v18 = vpop.f32.mrf.mxu0 }
 0x158   :  { %v807_v19 = vpop.f32.mrf.mxu1  ;;  %v412_v24 = vadd.f32 %v1857_v22, %v411_v18 }
 0x159   :  { %v808_v25 = vadd.f32 %v1862_v23, %v807_v19  ;;  %v413_v26 = vpop.f32.mrf.mxu0 }
 0x15a   :  { %v809_v27 = vpop.f32.mrf.mxu1  ;;  %v1383_v28 = vpack.c.bf16 %v412_v24, %v409_v20 }
 0x15b   :  { %v1448_v29 = vpack.c.bf16 %v808_v25, %v805_v21  ;;  %v416_v30 = vpop.f32.mrf.mxu0 }
 0x15c   :  { %v812_v31 = vpop.f32.mrf.mxu1  ;;  %1493 = vst [vmem:[#allocation10 + $0x20] sm:$0xff] %v1383_v28   ;;  %v417_v36 = vadd.f32 %v1857_v22, %v416_v30 }
 0x15d   :  { %1505 = vst [vmem:[#allocation11 + $0x20] sm:$0xff] %v1448_v29   ;;  %v418_v32 = vpop.f32.mrf.mxu0  ;;  %v813_v37 = vadd.f32 %v1862_v23, %v812_v31 }
 0x15e   :  { %v814_v33 = vpop.f32.mrf.mxu1 }
 0x15f   :  { %v419_v34 = vpop.f32.mrf.mxu0 }
 0x160   :  { %v815_v35 = vpop.f32.mrf.mxu1  ;;  %v420_v38 = vadd.f32 %v1857_v22, %v419_v34 }
 0x161   :  { %v816_v39 = vadd.f32 %v1862_v23, %v815_v35  ;;  %v421_v40 = vpop.f32.mrf.mxu0 }
 0x162   :  { %v817_v41 = vpop.f32.mrf.mxu1  ;;  %v1388_v42 = vpack.c.bf16 %v420_v38, %v417_v36 }
 0x163   :  { %v1453_v43 = vpack.c.bf16 %v816_v39, %v813_v37  ;;  %v424_v44 = vpop.f32.mrf.mxu0 }
 0x164   :  { %v820_v45 = vpop.f32.mrf.mxu1  ;;  %1494 = vst [vmem:[#allocation10 + $0x28] sm:$0xff] %v1388_v42   ;;  %v425_v50 = vadd.f32 %v1857_v22, %v424_v44 }
 0x165   :  { %1506 = vst [vmem:[#allocation11 + $0x28] sm:$0xff] %v1453_v43   ;;  %v426_v46 = vpop.f32.mrf.mxu0  ;;  %v821_v51 = vadd.f32 %v1862_v23, %v820_v45 }
 0x166   :  { %v822_v47 = vpop.f32.mrf.mxu1 }
 0x167   :  { %v427_v48 = vpop.f32.mrf.mxu0 }
 0x168   :  { %v823_v49 = vpop.f32.mrf.mxu1  ;;  %v428_v52 = vadd.f32 %v1857_v22, %v427_v48 }
 0x169   :  { %v824_v53 = vadd.f32 %v1862_v23, %v823_v49  ;;  %v429_v54 = vpop.f32.mrf.mxu0 }
 0x16a   :  { %v825_v55 = vpop.f32.mrf.mxu1  ;;  %v1393_v56 = vpack.c.bf16 %v428_v52, %v425_v50 }
 0x16b   :  { %v1458_v57 = vpack.c.bf16 %v824_v53, %v821_v51  ;;  %v432_v58 = vpop.f32.mrf.mxu0 }
 0x16c   :  { %v828_v59 = vpop.f32.mrf.mxu1  ;;  %1495 = vst [vmem:[#allocation10 + $0x30] sm:$0xff] %v1393_v56   ;;  %v433_v0 = vadd.f32 %v1857_v22, %v432_v58 }
 0x16d   :  { %1507 = vst [vmem:[#allocation11 + $0x30] sm:$0xff] %v1458_v57   ;;  %v434_v60 = vpop.f32.mrf.mxu0  ;;  %v829_v1 = vadd.f32 %v1862_v23, %v828_v59 }
 0x16e   :  { %v830_v61 = vpop.f32.mrf.mxu1 }
 0x16f   :  { %v435_v62 = vpop.f32.mrf.mxu0 }
 0x170   :  { %v831_v63 = vpop.f32.mrf.mxu1  ;;  %v436_v2 = vadd.f32 %v1857_v22, %v435_v62 }
 0x171   :  { %v832_v3 = vadd.f32 %v1862_v23, %v831_v63  ;;  %v437_v4 = vpop.f32.mrf.mxu0 }
 0x172   :  { %v833_v5 = vpop.f32.mrf.mxu1  ;;  %v1398_v6 = vpack.c.bf16 %v436_v2, %v433_v0 }
 0x173   :  { %v1463_v7 = vpack.c.bf16 %v832_v3, %v829_v1  ;;  %v440_v8 = vpop.f32.mrf.mxu0 }
 0x174   :  { %v836_v9 = vpop.f32.mrf.mxu1  ;;  %1496 = vst [vmem:[#allocation10 + $0x38] sm:$0xff] %v1398_v6   ;;  %v441_v14 = vadd.f32 %v1857_v22, %v440_v8 }
 0x175   :  { %1508 = vst [vmem:[#allocation11 + $0x38] sm:$0xff] %v1463_v7   ;;  %v442_v10 = vpop.f32.mrf.mxu0  ;;  %v837_v15 = vadd.f32 %v1862_v23, %v836_v9 }
 0x176   :  { %v838_v11 = vpop.f32.mrf.mxu1 }
 0x177   :  { %v443_v12 = vpop.f32.mrf.mxu0 }
 0x178   :  { %v839_v13 = vpop.f32.mrf.mxu1  ;;  %v444_v16 = vadd.f32 %v1857_v22, %v443_v12 }
 0x179   :  { %v840_v17 = vadd.f32 %v1862_v23, %v839_v13  ;;  %v445_v18 = vpop.f32.mrf.mxu0 }
 0x17a   :  { %v841_v19 = vpop.f32.mrf.mxu1  ;;  %v1403_v20 = vpack.c.bf16 %v444_v16, %v441_v14 }
 0x17b   :  { %v1468_v21 = vpack.c.bf16 %v840_v17, %v837_v15  ;;  %v448_v24 = vpop.f32.mrf.mxu0 }
 0x17c   :  { %v844_v25 = vpop.f32.mrf.mxu1  ;;  %1497 = vst [vmem:[#allocation10 + $0x40] sm:$0xff] %v1403_v20   ;;  %v449_v30 = vadd.f32 %v1857_v22, %v448_v24 }
 0x17d   :  { %1509 = vst [vmem:[#allocation11 + $0x40] sm:$0xff] %v1468_v21   ;;  %v450_v26 = vpop.f32.mrf.mxu0  ;;  %v845_v31 = vadd.f32 %v1862_v23, %v844_v25 }
 0x17e   :  { %v846_v27 = vpop.f32.mrf.mxu1 }
 0x17f   :  { %v451_v28 = vpop.f32.mrf.mxu0 }
 0x180   :  { %v847_v29 = vpop.f32.mrf.mxu1  ;;  %v452_v32 = vadd.f32 %v1857_v22, %v451_v28 }
 0x181   :  { %v848_v33 = vadd.f32 %v1862_v23, %v847_v29  ;;  %v453_v34 = vpop.f32.mrf.mxu0 }
 0x182   :  { %v849_v35 = vpop.f32.mrf.mxu1  ;;  %v1408_v36 = vpack.c.bf16 %v452_v32, %v449_v30 }
 0x183   :  { %v1473_v37 = vpack.c.bf16 %v848_v33, %v845_v31  ;;  %v456_v38 = vpop.f32.mrf.mxu0 }
 0x184   :  { %v852_v39 = vpop.f32.mrf.mxu1  ;;  %1498 = vst [vmem:[#allocation10 + $0x48] sm:$0xff] %v1408_v36   ;;  %v457_v44 = vadd.f32 %v1857_v22, %v456_v38 }
 0x185   :  { %1510 = vst [vmem:[#allocation11 + $0x48] sm:$0xff] %v1473_v37   ;;  %v458_v40 = vpop.f32.mrf.mxu0  ;;  %v853_v45 = vadd.f32 %v1862_v23, %v852_v39 }
 0x186   :  { %v854_v41 = vpop.f32.mrf.mxu1 }
 0x187   :  { %v459_v42 = vpop.f32.mrf.mxu0 }
 0x188   :  { %v855_v43 = vpop.f32.mrf.mxu1  ;;  %v460_v46 = vadd.f32 %v1857_v22, %v459_v42 }
 0x189   :  { %v856_v47 = vadd.f32 %v1862_v23, %v855_v43  ;;  %v461_v48 = vpop.f32.mrf.mxu0 }
 0x18a   :  { %v857_v49 = vpop.f32.mrf.mxu1  ;;  %v1413_v50 = vpack.c.bf16 %v460_v46, %v457_v44 }
 0x18b   :  { %v1478_v51 = vpack.c.bf16 %v856_v47, %v853_v45  ;;  %v464_v52 = vpop.f32.mrf.mxu0 }
 0x18c   :  { %v860_v53 = vpop.f32.mrf.mxu1  ;;  %1499 = vst [vmem:[#allocation10 + $0x50] sm:$0xff] %v1413_v50   ;;  %v465_v58 = vadd.f32 %v1857_v22, %v464_v52 }
 0x18d   :  { %1511 = vst [vmem:[#allocation11 + $0x50] sm:$0xff] %v1478_v51   ;;  %v466_v54 = vpop.f32.mrf.mxu0  ;;  %v861_v59 = vadd.f32 %v1862_v23, %v860_v53 }
 0x18e   :  { %v862_v55 = vpop.f32.mrf.mxu1 }
 0x18f   :  { %v467_v56 = vpop.f32.mrf.mxu0 }
 0x190   :  { %v863_v57 = vpop.f32.mrf.mxu1  ;;  %v468_v60 = vadd.f32 %v1857_v22, %v467_v56 }
 0x191   :  { %v864_v61 = vadd.f32 %v1862_v23, %v863_v57  ;;  %v469_v62 = vpop.f32.mrf.mxu0 }
 0x192   :  { %v865_v63 = vpop.f32.mrf.mxu1  ;;  %v1418_v0 = vpack.c.bf16 %v468_v60, %v465_v58 }
 0x193   :  { %v1483_v1 = vpack.c.bf16 %v864_v61, %v861_v59  ;;  %v472_v2 = vpop.f32.mrf.mxu0 }
 0x194   :  { %v868_v3 = vpop.f32.mrf.mxu1  ;;  %1500 = vst [vmem:[#allocation10 + $0x58] sm:$0xff] %v1418_v0   ;;  %v473_v8 = vadd.f32 %v1857_v22, %v472_v2 }
 0x195   :  { %1512 = vst [vmem:[#allocation11 + $0x58] sm:$0xff] %v1483_v1   ;;  %v474_v4 = vpop.f32.mrf.mxu0  ;;  %v869_v9 = vadd.f32 %v1862_v23, %v868_v3 }
 0x196   :  { %v870_v5 = vpop.f32.mrf.mxu1 }
 0x197   :  { %v475_v6 = vpop.f32.mrf.mxu0 }
 0x198   :  { %v871_v7 = vpop.f32.mrf.mxu1  ;;  %v476_v10 = vadd.f32 %v1857_v22, %v475_v6 }
 0x199   :  { %v872_v11 = vadd.f32 %v1862_v23, %v871_v7  ;;  %v477_v12 = vpop.f32.mrf.mxu0 }
 0x19a   :  { %v873_v13 = vpop.f32.mrf.mxu1  ;;  %v1423_v14 = vpack.c.bf16 %v476_v10, %v473_v8 }
 0x19b   :  { %v1488_v15 = vpack.c.bf16 %v872_v11, %v869_v9 }
 0x19c   :  { %1501 = vst [vmem:[#allocation10 + $0x60] sm:$0xff] %v1423_v14  }
 0x19d   :  { %1513 = vst [vmem:[#allocation11 + $0x60] sm:$0xff] %v1488_v15  }
 0x19e   :  { %1741 = shalt.err (!%p1738_p10)
}
 0x19f   :  { %s1788_s26 = smov 64   ;;  %s1789_s27 = smov 4  }
 0x1a0   :  { %1146 = dma.vmem_to_hbm [thread:$0]  %s1141_s5, 1664, %s1928_s6, [#allocation4], %s1788_s26, %s1788_s26, %s1789_s27  }
 0x1a1   :  { %s1750_s30 = scalar_lea.vmem %s1153_s24, 1664  ;;  %p1755_p12 = scmp.lt.s32.totalorder %s1153_s24, %s1153_s24 }
 0x1a2   :  { %p1751_p11 = scmp.ne.s32.totalorder %s1153_s24, %s1750_s30  ;;  %p1756_p13 = scmp.lt.s32.totalorder %s1750_s30, %s1750_s30 }
 0x1a4   :  { %p1757_p0 = por %p1756_p13, %p1755_p12 }
 0x1a6   :  { %p1758_p1 = pnand %p1757_p0, %p1751_p11 }
 0x1a8   :  { %1761 = shalt.err (!%p1758_p1)
}
 0x1a9   :  { %1158 = dma.vmem_to_hbm [thread:$0]  %s1153_s24, 1664, %s1929_s7, [#allocation12], %s1788_s26, %s1788_s26, %s1789_s27  }
 0x1aa   :  { %1776 = dma.done.wait [#allocation4], 1664  }
 0x1ab   :  { %1777 = vsyncadd [#allocation4], 4294965632 }
 0x1ac   :  { %1778 = dma.done.wait [#allocation12], 1664  }
 0x1ad   :  { %1779 = vsyncadd [#allocation12], 4294965632 }
 0x1ae   :  { %1165 = vsyncpa [#allocation3], 1 }
 0x1af   :  { %1166 = vsyncpa [#allocation6], 1 }
 0x1b0   :  { %1167 = vsyncpa [#allocation9], 1 }
 0x1b1   :  { %1168 = vsyncpa [#allocation4], 1 }
 0x1b2   :  { %1169 = vsyncpa [#allocation12], 1 }

</bundles_post_ra>
